<compile_context>
chip_gen: v7x
topology: tpu7x:2x2x1
jax: 0.10.0
libtpu: 0.0.40
codegen_flags: <defaults>
</compile_context>

<pallas_src>
import jax
import jax.numpy as jnp
from jax.experimental import pallas as pl
from jax.experimental.pallas import tpu as pltpu


_SMALL_OUT_BYTES = 1 << 20  # below this, let XLA fuse the cast into the consumer
_VMEM_BUDGET_BYTES = 12 * 1024 * 1024  # double-buffered in+out footprint target


def _seed_forward_kernel(seed_ref, out_ref):
    # forward(): return the parameter; the f32 cast is fused into the copy.
    out_ref[...] = seed_ref[...].astype(out_ref.dtype)


def _choose_row_tile(rows: int, cols: int, in_itemsize: int, out_itemsize: int) -> int:
    """Row-tile size.

    Whole axis for tiny inputs; otherwise a multiple of 8 sized so the
    double-buffered (in + out) footprint stays under ~12 MiB, and capped so
    the grid has at least 2 steps (lets v7x's two TensorCores split the DMA
    work; the extra ~0.35 us step is noise for the >=1 MiB arrays that reach
    this path).  No even-division search: the ragged tail block is masked.
    """
    if rows <= 8:
        return rows
    per_row_bytes = cols * (in_itemsize + out_itemsize)
    tb = _VMEM_BUDGET_BYTES // (2 * max(per_row_bytes, 1))
    tb = max(8, (tb // 8) * 8)
    # Keep >=2 grid iterations so "parallel" actually distributes rows.
    half = -(-rows // 2)              # cdiv(rows, 2)
    half = ((half + 7) // 8) * 8      # round up to a multiple of 8
    tb = min(tb, max(8, half), rows)
    return int(tb)


def optimizable_seed_forward(seed_vector: jax.Array, *, force_pallas: bool = False) -> jax.Array:
    """Pallas equivalent of optimizable_seed.forward().

    Returns the seed parameter as float32.  `force_pallas=True` bypasses the
    dispatch-level shortcuts (used for testing the kernel path).
    """
    out_dtype = jnp.float32
    orig_shape = seed_vector.shape
    B, D = orig_shape

    # --- Dispatch-level shortcuts (the dominant real-world wins) -----------
    if seed_vector.dtype == out_dtype and not force_pallas:
        # Pure identity: skip the kernel entirely (aliasing would still cost
        # a full HBM read + write).
        return seed_vector

    out_bytes = B * D * jnp.dtype(out_dtype).itemsize
    if out_bytes < _SMALL_OUT_BYTES and not force_pallas:
        # Tiny parameter (the canonical (2, 512) case): let XLA fuse the cast
        # into whatever consumes the latent.
        return seed_vector.astype(out_dtype)

    # --- Pallas streaming cast path ----------------------------------------
    # Lane-dense re-layout for tiny, sublane-ragged batches: (8, B*D//8)
    # fills all 8 sublanes and a lane multiple -> unmasked full-vreg stores.
    flatten = (0 < B < 8) and ((B * D) % (8 * 128) == 0)
    x = seed_vector.reshape(8, (B * D) // 8) if flatten else seed_vector
    rows, cols = x.shape

    in_itemsize = jnp.dtype(x.dtype).itemsize
    out_itemsize = jnp.dtype(out_dtype).itemsize
    tb = _choose_row_tile(rows, cols, in_itemsize, out_itemsize)
    grid = (pl.cdiv(rows, tb),)

    in_bytes = rows * cols * in_itemsize
    total_out_bytes = rows * cols * out_itemsize

    out = pl.pallas_call(
        _seed_forward_kernel,
        out_shape=jax.ShapeDtypeStruct((rows, cols), out_dtype),
        grid=grid,
        in_specs=[pl.BlockSpec((tb, cols), lambda i: (i, 0))],
        out_specs=pl.BlockSpec((tb, cols), lambda i: (i, 0)),
        compiler_params=pltpu.CompilerParams(
            dimension_semantics=("parallel",),
        ),
        cost_estimate=pl.CostEstimate(
            flops=0, transcendentals=0,
            bytes_accessed=in_bytes + total_out_bytes),
    )(x)

    return out.reshape(orig_shape) if flatten else out


if __name__ == "__main__":
    key = jax.random.PRNGKey(0)
    batch, latent_dim = 2, 512

    # --- Case 1: canonical module state — f32-stored parameter (identity). ---
    seed_f32 = jax.random.normal(key, (batch, latent_dim), dtype=jnp.float32)
    expected_f32 = jax.block_until_ready(jnp.copy(seed_f32))
    out1 = jax.block_until_ready(optimizable_seed_forward(seed_f32))
    assert out1.shape == (batch, latent_dim)
    assert out1.dtype == jnp.float32
    assert bool(jnp.array_equal(out1, expected_f32))

    # --- Case 2: tiny bf16-stored parameter, forced through the Pallas path
    #     (exercises the (8, B*D//8) lane-dense flatten + in-kernel cast). ---
    seed_bf16 = seed_f32.astype(jnp.bfloat16)
    expected_bf16 = jax.block_until_ready(seed_bf16.astype(jnp.float32))
    out2 = jax.block_until_ready(
        optimizable_seed_forward(seed_bf16, force_pallas=True))
    assert out2.shape == (batch, latent_dim)
    assert out2.dtype == jnp.float32
    assert bool(jnp.array_equal(out2, expected_bf16))

    # --- Case 3: larger bf16 batch, natural Pallas path (row-tiled grid). ---
    big_batch = 1024
    key2 = jax.random.fold_in(key, 1)
    seed_big = jax.random.normal(
        key2, (big_batch, latent_dim), dtype=jnp.float32).astype(jnp.bfloat16)
    expected_big = jax.block_until_ready(seed_big.astype(jnp.float32))
    out3 = jax.block_until_ready(optimizable_seed_forward(seed_big))
    assert out3.shape == (big_batch, latent_dim)
    assert out3.dtype == jnp.float32
    assert bool(jnp.array_equal(out3, expected_big))

    print("KERNEL_OK")
</pallas_src>

<mosaic_0001>
module attributes {stable_mosaic.version = 11 : i64} {
  func.func @_seed_forward_kernel(%arg0: i32, %arg1: memref<8x128xbf16, #tpu.memory_space<vmem>>, %arg2: memref<8x128xf32, #tpu.memory_space<vmem>>) attributes {dimension_semantics = [#tpu.dimension_semantics<parallel>], iteration_bounds = array<i64: 1>, scalar_prefetch = 0 : i64, scratch_operands = 0 : i64, tpu.core_type = #tpu.core_type<tc>, window_params = [{transform_indices = @transform_0, window_bounds = array<i64: 8, 128>}, {transform_indices = @transform_1, window_bounds = array<i64: 8, 128>}]} {
    %c0 = arith.constant 0 : index
    %c0_0 = arith.constant 0 : index
    %0 = vector.load %arg1[%c0, %c0_0] : memref<8x128xbf16, #tpu.memory_space<vmem>>, vector<8x128xbf16>
    %1 = arith.extf %0 : vector<8x128xbf16> to vector<8x128xf32>
    %c0_1 = arith.constant 0 : index
    %c0_2 = arith.constant 0 : index
    %2 = vector.load %arg2[%c0_1, %c0_2] : memref<8x128xf32, #tpu.memory_space<vmem>>, vector<8x128xf32>
    tpu.vector_store %arg2[%c0_1, %c0_2], %1 {strides = array<i32>} : memref<8x128xf32, #tpu.memory_space<vmem>>, vector<8x128xf32>,
    return
  }
  func.func @transform_0(%arg0: i32) -> (i32, i32) {
    %c0_i32 = arith.constant 0 : i32
    %c0_i32_0 = arith.constant 0 : i32
    return %arg0, %c0_i32 : i32, i32
  }
  func.func @transform_1(%arg0: i32) -> (i32, i32) {
    %c0_i32 = arith.constant 0 : i32
    %c0_i32_0 = arith.constant 0 : i32
    return %arg0, %c0_i32 : i32, i32
  }
}

</mosaic_0001>

<bundles_post_ra>
// kernel: tpu_custom_call.1
= control target key start
LH: loop header
LB: loop body
LE: loop exit
PB: predicated region body
PF: predicated region fallthrough
CT: control target
= control target key end

     0   :  { %6 = vsyncpa [#allocation3], 0  ;;  %s125_s0 = inlined_call_operand.hbm [shape: bf16[8,128], index: 0, kind: input, shape index: {}]   ;;  %s126_s1 = inlined_call_operand.hbm [shape: f32[8,128], index: 1, kind: output, shape index: {}]  }
   0x1   :  { %7 = vsyncpa [#allocation4], 0  ;;  %s89_s6 = smov [#allocation2]   ;;  %s41_s10 = scalar_lea.hbm %s125_s0, 64 }
   0x2   :  { %s14_s7 = sshll.u32 %s89_s6, 4  ;;  %p42_p0 = scmp.ne.s32.totalorder %s125_s0, %s41_s10  ;;  %s15_s7 = int_to_ptr.vmem [resolvable:$true] %s14_s7 }
   0x3   :  { %p45_p1 = scmp.lt.u32.totalorder %s41_s10, %s125_s0 }
   0x5   :  { %p47_p2 = pnand %p45_p1, %p42_p0 }
   0x7   :  { %50 = shalt.err (!%p47_p2)
}
   0x8   :  { %s51_s15 = scalar_lea.vmem %s15_s7, 64  ;;  %p56_p4 = scmp.lt.s32.totalorder %s15_s7, %s15_s7 }
   0x9   :  { %p52_p3 = scmp.ne.s32.totalorder %s15_s7, %s51_s15  ;;  %p57_p5 = scmp.lt.s32.totalorder %s51_s15, %s51_s15 }
   0xb   :  { %p58_p6 = por %p57_p5, %p56_p4 }
   0xd   :  { %p59_p7 = pnand %p58_p6, %p52_p3 }
   0xf   :  { %62 = shalt.err (!%p59_p7)
}
  0x10   :  { %17 = dma.hbm_to_vmem [thread:$0]  %s125_s0, 64, %s15_s7, [#allocation3]  }
  0x11   :  { %85 = dma.done.wait [#allocation3], 64  }
  0x12   :  { %86 = vsyncadd [#allocation3], 4294967232  ;;  %s90_s18 = smov [#allocation5]   ;;  %v21_v0 = vld [vmem:[#allocation2] sm:$0xf] }
  0x13   :  { %s30_s19 = sshll.u32 %s90_s18, 4  ;;  %v22_v1 = vunpack.c.l.bf16 %v21_v0  ;;  %s31_s19 = int_to_ptr.vmem [resolvable:$true] %s30_s19 }
  0x14   :  { %s63_s20 = scalar_lea.vmem %s31_s19, 128  ;;  %p68_p9 = scmp.lt.s32.totalorder %s31_s19, %s31_s19 }
  0x15   :  { %23 = vst [vmem:[#allocation5] sm:$0xff] %v22_v1  ;;  %p64_p8 = scmp.ne.s32.totalorder %s31_s19, %s63_s20  ;;  %p69_p10 = scmp.lt.s32.totalorder %s63_s20, %s63_s20 }
  0x17   :  { %p70_p11 = por %p69_p10, %p68_p9 }
  0x19   :  { %p71_p12 = pnand %p70_p11, %p64_p8 }
  0x1b   :  { %74 = shalt.err (!%p71_p12)
}
  0x1c   :  { %s75_s23 = scalar_lea.hbm %s126_s1, 128 }
  0x1d   :  { %p76_p13 = scmp.ne.s32.totalorder %s126_s1, %s75_s23  ;;  %p79_p0 = scmp.lt.u32.totalorder %s75_s23, %s126_s1 }
  0x1f   :  { %p81_p1 = pnand %p79_p0, %p76_p13 }
  0x21   :  { %84 = shalt.err (!%p81_p1)
}
  0x22   :  { %33 = dma.vmem_to_hbm [thread:$0]  %s31_s19, 128, %s126_s1, [#allocation4]  }
  0x23   :  { %87 = dma.done.wait [#allocation4], 128  }
  0x24   :  { %88 = vsyncadd [#allocation4], 4294967168 }
  0x25   :  { %37 = vsyncpa [#allocation3], 1 }
  0x26   :  { %38 = vsyncpa [#allocation4], 1 }

</bundles_post_ra>
